<compile_context>
chip_gen: v7x
topology: tpu7x:2x2x1
jax: 0.10.0
libtpu: 0.0.40
codegen_flags: <defaults>
</compile_context>

<pallas_src>
import numpy as np
import jax
import jax.numpy as jnp
from jax.experimental import pallas as pl
from jax.experimental.pallas import tpu as pltpu

EPS = 1e-5  # nn.GroupNorm default


def _round_up(x, m):
    return ((x + m - 1) // m) * m


# ----------------------------------------------------------------------------
# Parameter glue: turn a ConvTranspose1d weight into a dense matmul matrix,
# zero-padded to (rows_pad, cols_pad) so activations stay lane-dense.
# ----------------------------------------------------------------------------
def _build_ct_matrix(w, l_in, stride, rows_pad, cols_pad):
    """w: (C_in, C_out, K) PyTorch ConvTranspose1d weight layout."""
    c_in, c_out, k = w.shape
    l_out = (l_in - 1) * stride + k
    m = np.zeros((rows_pad, cols_pad), dtype=np.float32)
    for ci in range(c_in):
        for l in range(l_in):
            row = ci * l_in + l
            for co in range(c_out):
                base = co * l_out + l * stride
                m[row, base:base + k] += w[ci, co, :]
    return m, l_out


def _expand_per_channel(v, l_out, width_pad):
    """(C,) -> (1, width_pad): repeat along flattened (c*L + t) axis, zero pad."""
    v = np.asarray(v, dtype=np.float32)
    out = np.zeros((1, width_pad), dtype=np.float32)
    out[0, : v.shape[0] * l_out] = np.repeat(v, l_out)
    return out


# ----------------------------------------------------------------------------
# Fused GroupNorm(1, C) + SiLU over a width-padded activation.
# Padded lanes are exactly zero on entry (zero weight cols + zero bias), so
# sums over the full padded width divided by the *valid* width give correct
# statistics; gamma/beta are zero on padded lanes so they stay zero on exit.
# ----------------------------------------------------------------------------
def _gn_silu(h, gamma, beta, valid_width):
    inv = 1.0 / float(valid_width)
    s1 = jnp.sum(h, axis=-1, keepdims=True)
    s2 = jnp.sum(h * h, axis=-1, keepdims=True)
    mean = s1 * inv
    var = s2 * inv - mean * mean          # one-pass variance
    hn = (h - mean) * jax.lax.rsqrt(var + EPS)
    hn = hn * gamma + beta
    return hn * jax.nn.sigmoid(hn)        # SiLU


# ----------------------------------------------------------------------------
# Pallas kernel: full reconstruction chain (4 transposed convs + norms + acts).
# ----------------------------------------------------------------------------
def _make_kernel(gn_valid_widths):
    w1, w2, w3 = gn_valid_widths

    def recon_kernel(x_ref,
                     m1_ref, b1_ref, g1_ref, a1_ref,
                     m2_ref, b2_ref, g2_ref, a2_ref,
                     m3_ref, b3_ref, g3_ref, a3_ref,
                     m4_ref, b4_ref,
                     o_ref):
        h = x_ref[...]
        # conv1 (k=3, s=1): L 1 -> 3, GN + SiLU
        h = jnp.dot(h.astype(jnp.bfloat16), m1_ref[...],
                    preferred_element_type=jnp.float32) + b1_ref[...]
        h = _gn_silu(h, g1_ref[...], a1_ref[...], w1)
        # conv2 (k=5, s=2): L 3 -> 9, GN + SiLU
        h = jnp.dot(h.astype(jnp.bfloat16), m2_ref[...],
                    preferred_element_type=jnp.float32) + b2_ref[...]
        h = _gn_silu(h, g2_ref[...], a2_ref[...], w2)
        # conv3 (k=5, s=3): L 9 -> 29, GN + SiLU
        h = jnp.dot(h.astype(jnp.bfloat16), m3_ref[...],
                    preferred_element_type=jnp.float32) + b3_ref[...]
        h = _gn_silu(h, g3_ref[...], a3_ref[...], w3)
        # conv4 (k=6, s=3): L 29 -> 90, Tanh
        h = jnp.dot(h.astype(jnp.bfloat16), m4_ref[...],
                    preferred_element_type=jnp.float32) + b4_ref[...]
        o_ref[...] = jnp.tanh(h)

    return recon_kernel


# ----------------------------------------------------------------------------
# Wrapper
# ----------------------------------------------------------------------------
class ReconstructionPallas:
    def __init__(self, latent_ndim, n_pts, seq_len, key):
        assert latent_ndim % 8 == 0
        self.latent_ndim = latent_ndim
        self.n_pts = n_pts
        self.seq_len = seq_len

        d = latent_ndim
        specs = [  # (c_in, c_out, k, stride, has_groupnorm)
            (d, d // 2, 3, 1, True),
            (d // 2, d // 4, 5, 2, True),
            (d // 4, d // 8, 5, 3, True),
            (d // 8, 2, 6, 3, False),
        ]

        keys = jax.random.split(key, len(specs) * 2)
        self.mats, self.biases, self.gammas, self.betas = [], [], [], []
        self.gn_valid_widths = []
        l_in = 1
        in_width = latent_ndim  # row count of the first matrix (unpadded input)
        for i, (c_in, c_out, k, s, has_gn) in enumerate(specs):
            l_out = (l_in - 1) * s + k
            out_valid = c_out * l_out
            out_pad = _round_up(out_valid, 128)  # lane-dense activation width

            fan = c_in * k
            w = np.asarray(
                jax.random.normal(keys[2 * i], (c_in, c_out, k), jnp.float32)
            ) / np.sqrt(fan)
            b = np.asarray(
                jax.random.normal(keys[2 * i + 1], (c_out,), jnp.float32)
            ) * 0.01

            m, _ = _build_ct_matrix(w, l_in, s, in_width, out_pad)
            self.mats.append(jnp.asarray(m, dtype=jnp.bfloat16))   # bf16 MXU path
            self.biases.append(jnp.asarray(_expand_per_channel(b, l_out, out_pad)))
            if has_gn:
                gamma = np.ones((c_out,), np.float32)
                beta = np.zeros((c_out,), np.float32)
                self.gammas.append(
                    jnp.asarray(_expand_per_channel(gamma, l_out, out_pad)))
                self.betas.append(
                    jnp.asarray(_expand_per_channel(beta, l_out, out_pad)))
                self.gn_valid_widths.append(out_valid)

            l_in = l_out
            in_width = out_pad

        assert l_in == seq_len, f"architecture implies seq_len={l_in}"
        self.out_valid = 2 * seq_len       # 180
        self.out_pad = in_width            # padded output width (256 for 180)
        self._kernel = _make_kernel(tuple(self.gn_valid_widths))

    def __call__(self, zq):
        # zq: any shape flattening to (batch * n_pts, latent_ndim)
        batch = zq.shape[0]
        x = zq.reshape(-1, self.latent_ndim).astype(jnp.float32)
        n = x.shape[0]

        # Row-tile: 256 rows (multiple of 128 for v5e, fills 256-wide MXU on
        # v6e/v7x, >=2 grid tiles shards work across v7x's two TensorCores).
        # For small N use a single block so there is no per-step pipeline
        # overhead at all.
        tn = 256 if n >= 512 else max(8, _round_up(n, 8))
        n_pad = _round_up(n, tn)
        if n_pad != n:
            x = jnp.pad(x, ((0, n_pad - n), (0, 0)))

        params = []
        in_specs = [pl.BlockSpec((tn, self.latent_ndim), lambda i: (i, 0))]

        def full_spec(arr):
            return pl.BlockSpec(arr.shape, lambda i: (0, 0))

        for layer in range(4):
            params.append(self.mats[layer])
            params.append(self.biases[layer])
            in_specs.append(full_spec(self.mats[layer]))
            in_specs.append(full_spec(self.biases[layer]))
            if layer < 3:
                params.append(self.gammas[layer])
                params.append(self.betas[layer])
                in_specs.append(full_spec(self.gammas[layer]))
                in_specs.append(full_spec(self.betas[layer]))

        # Advisory cost hint: this kernel is byte-dominated, not FLOP-heavy.
        flops = 2 * n_pad * int(sum(m.shape[0] * m.shape[1] for m in self.mats))
        transcendentals = n_pad * int(
            sum(self.gn_valid_widths) + 3 + self.out_valid)
        bytes_accessed = int(
            x.size * x.dtype.itemsize
            + n_pad * self.out_pad * 4
            + sum(int(np.prod(p.shape)) * p.dtype.itemsize for p in params))

        out = pl.pallas_call(
            self._kernel,
            out_shape=jax.ShapeDtypeStruct((n_pad, self.out_pad), jnp.float32),
            grid_spec=pltpu.PrefetchScalarGridSpec(
                num_scalar_prefetch=0,
                grid=(n_pad // tn,),
                in_specs=in_specs,
                out_specs=pl.BlockSpec((tn, self.out_pad), lambda i: (i, 0)),
            ),
            compiler_params=pltpu.CompilerParams(
                dimension_semantics=("parallel",)
            ),
            cost_estimate=pl.CostEstimate(
                flops=flops,
                transcendentals=transcendentals,
                bytes_accessed=bytes_accessed),
        )(x, *params)

        # Drop row/lane padding, then reshape to PyTorch output layout:
        # (batch*n_pts, 2*seq_len) -> (batch, n_pts, 2, seq_len) -> permute(0,3,1,2)
        out = out[:n, : self.out_valid]
        out = out.reshape(batch, self.n_pts, 2, self.seq_len)
        out = jnp.transpose(out, (0, 3, 1, 2))
        return out


if __name__ == "__main__":
    # Small config consistent with the module: seq_len is fixed at 90 by the
    # transposed-conv chain (1 -> 3 -> 9 -> 29 -> 90).
    latent_ndim = 32
    n_pts = 4
    seq_len = 90
    batch = 2

    key = jax.random.PRNGKey(0)
    k_in, k_params = jax.random.split(key)

    model = ReconstructionPallas(latent_ndim, n_pts, seq_len, k_params)

    zq = jax.random.normal(k_in, (batch, n_pts, latent_ndim), dtype=jnp.float32)
    out = model(zq)
    out = jax.block_until_ready(out)

    assert out.shape == (batch, seq_len, n_pts, 2), out.shape
    assert bool(jnp.all(jnp.isfinite(out)))
    print("KERNEL_OK")
</pallas_src>

<mosaic_0001>
module attributes {stable_mosaic.version = 11 : i64} {
  func.func @recon_kernel(%arg0: i32, %arg1: memref<8x32xf32, #tpu.memory_space<vmem>>, %arg2: memref<32x128xbf16, #tpu.memory_space<vmem>>, %arg3: memref<1x128xf32, #tpu.memory_space<vmem>>, %arg4: memref<1x128xf32, #tpu.memory_space<vmem>>, %arg5: memref<1x128xf32, #tpu.memory_space<vmem>>, %arg6: memref<128x128xbf16, #tpu.memory_space<vmem>>, %arg7: memref<1x128xf32, #tpu.memory_space<vmem>>, %arg8: memref<1x128xf32, #tpu.memory_space<vmem>>, %arg9: memref<1x128xf32, #tpu.memory_space<vmem>>, %arg10: memref<128x128xbf16, #tpu.memory_space<vmem>>, %arg11: memref<1x128xf32, #tpu.memory_space<vmem>>, %arg12: memref<1x128xf32, #tpu.memory_space<vmem>>, %arg13: memref<1x128xf32, #tpu.memory_space<vmem>>, %arg14: memref<128x256xbf16, #tpu.memory_space<vmem>>, %arg15: memref<1x256xf32, #tpu.memory_space<vmem>>, %arg16: memref<8x256xf32, #tpu.memory_space<vmem>>) attributes {dimension_semantics = [#tpu.dimension_semantics<parallel>], iteration_bounds = array<i64: 1>, scalar_prefetch = 0 : i64, scratch_operands = 0 : i64, tpu.core_type = #tpu.core_type<tc>, window_params = [{transform_indices = @transform_0, window_bounds = array<i64: 8, 32>}, {pipeline_mode = #tpu.pipeline_mode<synchronous>, transform_indices = @transform_1, window_bounds = array<i64: 32, 128>}, {pipeline_mode = #tpu.pipeline_mode<synchronous>, transform_indices = @transform_2, window_bounds = array<i64: 1, 128>}, {pipeline_mode = #tpu.pipeline_mode<synchronous>, transform_indices = @transform_3, window_bounds = array<i64: 1, 128>}, {pipeline_mode = #tpu.pipeline_mode<synchronous>, transform_indices = @transform_4, window_bounds = array<i64: 1, 128>}, {pipeline_mode = #tpu.pipeline_mode<synchronous>, transform_indices = @transform_5, window_bounds = array<i64: 128, 128>}, {pipeline_mode = #tpu.pipeline_mode<synchronous>, transform_indices = @transform_6, window_bounds = array<i64: 1, 128>}, {pipeline_mode = #tpu.pipeline_mode<synchronous>, transform_indices = @transform_7, window_bounds = array<i64: 1, 128>}, {pipeline_mode = #tpu.pipeline_mode<synchronous>, transform_indices = @transform_8, window_bounds = array<i64: 1, 128>}, {pipeline_mode = #tpu.pipeline_mode<synchronous>, transform_indices = @transform_9, window_bounds = array<i64: 128, 128>}, {pipeline_mode = #tpu.pipeline_mode<synchronous>, transform_indices = @transform_10, window_bounds = array<i64: 1, 128>}, {pipeline_mode = #tpu.pipeline_mode<synchronous>, transform_indices = @transform_11, window_bounds = array<i64: 1, 128>}, {pipeline_mode = #tpu.pipeline_mode<synchronous>, transform_indices = @transform_12, window_bounds = array<i64: 1, 128>}, {pipeline_mode = #tpu.pipeline_mode<synchronous>, transform_indices = @transform_13, window_bounds = array<i64: 128, 256>}, {pipeline_mode = #tpu.pipeline_mode<synchronous>, transform_indices = @transform_14, window_bounds = array<i64: 1, 256>}, {transform_indices = @transform_15, window_bounds = array<i64: 8, 256>}]} {
    %c0 = arith.constant 0 : index
    %c0_0 = arith.constant 0 : index
    %0 = vector.load %arg1[%c0, %c0_0] : memref<8x32xf32, #tpu.memory_space<vmem>>, vector<8x32xf32>
    %1 = arith.truncf %0 : vector<8x32xf32> to vector<8x32xbf16>
    %c0_1 = arith.constant 0 : index
    %c0_2 = arith.constant 0 : index
    %2 = vector.load %arg2[%c0_1, %c0_2] : memref<32x128xbf16, #tpu.memory_space<vmem>>, vector<32x128xbf16>
    %cst = arith.constant dense<0.000000e+00> : vector<8x128xf32>
    %3 = tpu.matmul %1, %2, %cst {dimension_numbers = #tpu.dot_dimension_numbers<[1], [0], [0], [1], [0, 0, 1, 1], [], []>} : vector<8x32xbf16>, vector<32x128xbf16>, vector<8x128xf32> -> vector<8x128xf32>
    %c0_3 = arith.constant 0 : index
    %c0_4 = arith.constant 0 : index
    %4 = vector.load %arg3[%c0_3, %c0_4] : memref<1x128xf32, #tpu.memory_space<vmem>>, vector<1x128xf32>
    %5 = vector.broadcast %4 : vector<1x128xf32> to vector<8x128xf32>
    %6 = arith.addf %3, %5 : vector<8x128xf32>
    %c0_5 = arith.constant 0 : index
    %c0_6 = arith.constant 0 : index
    %7 = vector.load %arg4[%c0_5, %c0_6] : memref<1x128xf32, #tpu.memory_space<vmem>>, vector<1x128xf32>
    %c0_7 = arith.constant 0 : index
    %c0_8 = arith.constant 0 : index
    %8 = vector.load %arg5[%c0_7, %c0_8] : memref<1x128xf32, #tpu.memory_space<vmem>>, vector<1x128xf32>
    %cst_9 = arith.constant dense<0.000000e+00> : vector<8xf32>
    %9 = vector.multi_reduction <add>, %6, %cst_9 [1] : vector<8x128xf32> to vector<8xf32>
    %10 = vector.shape_cast %9 : vector<8xf32> to vector<8x1xf32>
    %11 = arith.mulf %6, %6 : vector<8x128xf32>
    %cst_10 = arith.constant dense<0.000000e+00> : vector<8xf32>
    %12 = vector.multi_reduction <add>, %11, %cst_10 [1] : vector<8x128xf32> to vector<8xf32>
    %13 = vector.shape_cast %12 : vector<8xf32> to vector<8x1xf32>
    %cst_11 = arith.constant 0.020833334 : f32
    %14 = vector.broadcast %cst_11 : f32 to vector<8x1xf32>
    %15 = arith.mulf %10, %14 : vector<8x1xf32>
    %cst_12 = arith.constant 0.020833334 : f32
    %16 = vector.broadcast %cst_12 : f32 to vector<8x1xf32>
    %17 = arith.mulf %13, %16 : vector<8x1xf32>
    %18 = arith.mulf %15, %15 : vector<8x1xf32>
    %19 = arith.subf %17, %18 : vector<8x1xf32>
    %20 = vector.broadcast %15 : vector<8x1xf32> to vector<8x128xf32>
    %21 = arith.subf %6, %20 : vector<8x128xf32>
    %cst_13 = arith.constant 9.99999974E-6 : f32
    %22 = vector.broadcast %cst_13 : f32 to vector<8x1xf32>
    %23 = arith.addf %19, %22 : vector<8x1xf32>
    %24 = math.rsqrt %23 : vector<8x1xf32>
    %25 = vector.broadcast %24 : vector<8x1xf32> to vector<8x128xf32>
    %26 = arith.mulf %21, %25 : vector<8x128xf32>
    %27 = vector.broadcast %7 : vector<1x128xf32> to vector<8x128xf32>
    %28 = arith.mulf %26, %27 : vector<8x128xf32>
    %29 = vector.broadcast %8 : vector<1x128xf32> to vector<8x128xf32>
    %30 = arith.addf %28, %29 : vector<8x128xf32>
    %31 = arith.negf %30 : vector<8x128xf32>
    %32 = math.exp %31 : vector<8x128xf32>
    %cst_14 = arith.constant 1.000000e+00 : f32
    %33 = vector.broadcast %cst_14 : f32 to vector<8x128xf32>
    %34 = arith.addf %33, %32 : vector<8x128xf32>
    %35 = arith.divf %33, %34 : vector<8x128xf32>
    %36 = arith.mulf %30, %35 : vector<8x128xf32>
    %37 = arith.truncf %36 : vector<8x128xf32> to vector<8x128xbf16>
    %c0_15 = arith.constant 0 : index
    %c0_16 = arith.constant 0 : index
    %38 = vector.load %arg6[%c0_15, %c0_16] : memref<128x128xbf16, #tpu.memory_space<vmem>>, vector<128x128xbf16>
    %cst_17 = arith.constant dense<0.000000e+00> : vector<8x128xf32>
    %39 = tpu.matmul %37, %38, %cst_17 {dimension_numbers = #tpu.dot_dimension_numbers<[1], [0], [0], [1], [0, 0, 1, 1], [], []>} : vector<8x128xbf16>, vector<128x128xbf16>, vector<8x128xf32> -> vector<8x128xf32>
    %c0_18 = arith.constant 0 : index
    %c0_19 = arith.constant 0 : index
    %40 = vector.load %arg7[%c0_18, %c0_19] : memref<1x128xf32, #tpu.memory_space<vmem>>, vector<1x128xf32>
    %41 = vector.broadcast %40 : vector<1x128xf32> to vector<8x128xf32>
    %42 = arith.addf %39, %41 : vector<8x128xf32>
    %c0_20 = arith.constant 0 : index
    %c0_21 = arith.constant 0 : index
    %43 = vector.load %arg8[%c0_20, %c0_21] : memref<1x128xf32, #tpu.memory_space<vmem>>, vector<1x128xf32>
    %c0_22 = arith.constant 0 : index
    %c0_23 = arith.constant 0 : index
    %44 = vector.load %arg9[%c0_22, %c0_23] : memref<1x128xf32, #tpu.memory_space<vmem>>, vector<1x128xf32>
    %cst_24 = arith.constant dense<0.000000e+00> : vector<8xf32>
    %45 = vector.multi_reduction <add>, %42, %cst_24 [1] : vector<8x128xf32> to vector<8xf32>
    %46 = vector.shape_cast %45 : vector<8xf32> to vector<8x1xf32>
    %47 = arith.mulf %42, %42 : vector<8x128xf32>
    %cst_25 = arith.constant dense<0.000000e+00> : vector<8xf32>
    %48 = vector.multi_reduction <add>, %47, %cst_25 [1] : vector<8x128xf32> to vector<8xf32>
    %49 = vector.shape_cast %48 : vector<8xf32> to vector<8x1xf32>
    %cst_26 = arith.constant 0.013888889 : f32
    %50 = vector.broadcast %cst_26 : f32 to vector<8x1xf32>
    %51 = arith.mulf %46, %50 : vector<8x1xf32>
    %cst_27 = arith.constant 0.013888889 : f32
    %52 = vector.broadcast %cst_27 : f32 to vector<8x1xf32>
    %53 = arith.mulf %49, %52 : vector<8x1xf32>
    %54 = arith.mulf %51, %51 : vector<8x1xf32>
    %55 = arith.subf %53, %54 : vector<8x1xf32>
    %56 = vector.broadcast %51 : vector<8x1xf32> to vector<8x128xf32>
    %57 = arith.subf %42, %56 : vector<8x128xf32>
    %cst_28 = arith.constant 9.99999974E-6 : f32
    %58 = vector.broadcast %cst_28 : f32 to vector<8x1xf32>
    %59 = arith.addf %55, %58 : vector<8x1xf32>
    %60 = math.rsqrt %59 : vector<8x1xf32>
    %61 = vector.broadcast %60 : vector<8x1xf32> to vector<8x128xf32>
    %62 = arith.mulf %57, %61 : vector<8x128xf32>
    %63 = vector.broadcast %43 : vector<1x128xf32> to vector<8x128xf32>
    %64 = arith.mulf %62, %63 : vector<8x128xf32>
    %65 = vector.broadcast %44 : vector<1x128xf32> to vector<8x128xf32>
    %66 = arith.addf %64, %65 : vector<8x128xf32>
    %67 = arith.negf %66 : vector<8x128xf32>
    %68 = math.exp %67 : vector<8x128xf32>
    %cst_29 = arith.constant 1.000000e+00 : f32
    %69 = vector.broadcast %cst_29 : f32 to vector<8x128xf32>
    %70 = arith.addf %69, %68 : vector<8x128xf32>
    %71 = arith.divf %69, %70 : vector<8x128xf32>
    %72 = arith.mulf %66, %71 : vector<8x128xf32>
    %73 = arith.truncf %72 : vector<8x128xf32> to vector<8x128xbf16>
    %c0_30 = arith.constant 0 : index
    %c0_31 = arith.constant 0 : index
    %74 = vector.load %arg10[%c0_30, %c0_31] : memref<128x128xbf16, #tpu.memory_space<vmem>>, vector<128x128xbf16>
    %cst_32 = arith.constant dense<0.000000e+00> : vector<8x128xf32>
    %75 = tpu.matmul %73, %74, %cst_32 {dimension_numbers = #tpu.dot_dimension_numbers<[1], [0], [0], [1], [0, 0, 1, 1], [], []>} : vector<8x128xbf16>, vector<128x128xbf16>, vector<8x128xf32> -> vector<8x128xf32>
    %c0_33 = arith.constant 0 : index
    %c0_34 = arith.constant 0 : index
    %76 = vector.load %arg11[%c0_33, %c0_34] : memref<1x128xf32, #tpu.memory_space<vmem>>, vector<1x128xf32>
    %77 = vector.broadcast %76 : vector<1x128xf32> to vector<8x128xf32>
    %78 = arith.addf %75, %77 : vector<8x128xf32>
    %c0_35 = arith.constant 0 : index
    %c0_36 = arith.constant 0 : index
    %79 = vector.load %arg12[%c0_35, %c0_36] : memref<1x128xf32, #tpu.memory_space<vmem>>, vector<1x128xf32>
    %c0_37 = arith.constant 0 : index
    %c0_38 = arith.constant 0 : index
    %80 = vector.load %arg13[%c0_37, %c0_38] : memref<1x128xf32, #tpu.memory_space<vmem>>, vector<1x128xf32>
    %cst_39 = arith.constant dense<0.000000e+00> : vector<8xf32>
    %81 = vector.multi_reduction <add>, %78, %cst_39 [1] : vector<8x128xf32> to vector<8xf32>
    %82 = vector.shape_cast %81 : vector<8xf32> to vector<8x1xf32>
    %83 = arith.mulf %78, %78 : vector<8x128xf32>
    %cst_40 = arith.constant dense<0.000000e+00> : vector<8xf32>
    %84 = vector.multi_reduction <add>, %83, %cst_40 [1] : vector<8x128xf32> to vector<8xf32>
    %85 = vector.shape_cast %84 : vector<8xf32> to vector<8x1xf32>
    %cst_41 = arith.constant 8.620690e-03 : f32
    %86 = vector.broadcast %cst_41 : f32 to vector<8x1xf32>
    %87 = arith.mulf %82, %86 : vector<8x1xf32>
    %cst_42 = arith.constant 8.620690e-03 : f32
    %88 = vector.broadcast %cst_42 : f32 to vector<8x1xf32>
    %89 = arith.mulf %85, %88 : vector<8x1xf32>
    %90 = arith.mulf %87, %87 : vector<8x1xf32>
    %91 = arith.subf %89, %90 : vector<8x1xf32>
    %92 = vector.broadcast %87 : vector<8x1xf32> to vector<8x128xf32>
    %93 = arith.subf %78, %92 : vector<8x128xf32>
    %cst_43 = arith.constant 9.99999974E-6 : f32
    %94 = vector.broadcast %cst_43 : f32 to vector<8x1xf32>
    %95 = arith.addf %91, %94 : vector<8x1xf32>
    %96 = math.rsqrt %95 : vector<8x1xf32>
    %97 = vector.broadcast %96 : vector<8x1xf32> to vector<8x128xf32>
    %98 = arith.mulf %93, %97 : vector<8x128xf32>
    %99 = vector.broadcast %79 : vector<1x128xf32> to vector<8x128xf32>
    %100 = arith.mulf %98, %99 : vector<8x128xf32>
    %101 = vector.broadcast %80 : vector<1x128xf32> to vector<8x128xf32>
    %102 = arith.addf %100, %101 : vector<8x128xf32>
    %103 = arith.negf %102 : vector<8x128xf32>
    %104 = math.exp %103 : vector<8x128xf32>
    %cst_44 = arith.constant 1.000000e+00 : f32
    %105 = vector.broadcast %cst_44 : f32 to vector<8x128xf32>
    %106 = arith.addf %105, %104 : vector<8x128xf32>
    %107 = arith.divf %105, %106 : vector<8x128xf32>
    %108 = arith.mulf %102, %107 : vector<8x128xf32>
    %109 = arith.truncf %108 : vector<8x128xf32> to vector<8x128xbf16>
    %c0_45 = arith.constant 0 : index
    %c0_46 = arith.constant 0 : index
    %110 = vector.load %arg14[%c0_45, %c0_46] : memref<128x256xbf16, #tpu.memory_space<vmem>>, vector<128x256xbf16>
    %cst_47 = arith.constant dense<0.000000e+00> : vector<8x256xf32>
    %111 = tpu.matmul %109, %110, %cst_47 {dimension_numbers = #tpu.dot_dimension_numbers<[1], [0], [0], [1], [0, 0, 1, 1], [], []>} : vector<8x128xbf16>, vector<128x256xbf16>, vector<8x256xf32> -> vector<8x256xf32>
    %c0_48 = arith.constant 0 : index
    %c0_49 = arith.constant 0 : index
    %112 = vector.load %arg15[%c0_48, %c0_49] : memref<1x256xf32, #tpu.memory_space<vmem>>, vector<1x256xf32>
    %113 = vector.broadcast %112 : vector<1x256xf32> to vector<8x256xf32>
    %114 = arith.addf %111, %113 : vector<8x256xf32>
    %115 = math.tanh %114 : vector<8x256xf32>
    %c0_50 = arith.constant 0 : index
    %c0_51 = arith.constant 0 : index
    %116 = vector.load %arg16[%c0_50, %c0_51] : memref<8x256xf32, #tpu.memory_space<vmem>>, vector<8x256xf32>
    tpu.vector_store %arg16[%c0_50, %c0_51], %115 {strides = array<i32>} : memref<8x256xf32, #tpu.memory_space<vmem>>, vector<8x256xf32>,
    return
  }
  func.func @transform_0(%arg0: i32) -> (i32, i32) {
    %c0_i32 = arith.constant 0 : i32
    %c0_i32_0 = arith.constant 0 : i32
    return %arg0, %c0_i32 : i32, i32
  }
  func.func @transform_1(%arg0: i32) -> (i32, i32) {
    %c0_i32 = arith.constant 0 : i32
    %c0_i32_0 = arith.constant 0 : i32
    %c0_i32_1 = arith.constant 0 : i32
    return %c0_i32, %c0_i32_0 : i32, i32
  }
  func.func @transform_2(%arg0: i32) -> (i32, i32) {
    %c0_i32 = arith.constant 0 : i32
    %c0_i32_0 = arith.constant 0 : i32
    %c0_i32_1 = arith.constant 0 : i32
    return %c0_i32, %c0_i32_0 : i32, i32
  }
  func.func @transform_3(%arg0: i32) -> (i32, i32) {
    %c0_i32 = arith.constant 0 : i32
    %c0_i32_0 = arith.constant 0 : i32
    %c0_i32_1 = arith.constant 0 : i32
    return %c0_i32, %c0_i32_0 : i32, i32
  }
  func.func @transform_4(%arg0: i32) -> (i32, i32) {
    %c0_i32 = arith.constant 0 : i32
    %c0_i32_0 = arith.constant 0 : i32
    %c0_i32_1 = arith.constant 0 : i32
    return %c0_i32, %c0_i32_0 : i32, i32
  }
  func.func @transform_5(%arg0: i32) -> (i32, i32) {
    %c0_i32 = arith.constant 0 : i32
    %c0_i32_0 = arith.constant 0 : i32
    %c0_i32_1 = arith.constant 0 : i32
    return %c0_i32, %c0_i32_0 : i32, i32
  }
  func.func @transform_6(%arg0: i32) -> (i32, i32) {
    %c0_i32 = arith.constant 0 : i32
    %c0_i32_0 = arith.constant 0 : i32
    %c0_i32_1 = arith.constant 0 : i32
    return %c0_i32, %c0_i32_0 : i32, i32
  }
  func.func @transform_7(%arg0: i32) -> (i32, i32) {
    %c0_i32 = arith.constant 0 : i32
    %c0_i32_0 = arith.constant 0 : i32
    %c0_i32_1 = arith.constant 0 : i32
    return %c0_i32, %c0_i32_0 : i32, i32
  }
  func.func @transform_8(%arg0: i32) -> (i32, i32) {
    %c0_i32 = arith.constant 0 : i32
    %c0_i32_0 = arith.constant 0 : i32
    %c0_i32_1 = arith.constant 0 : i32
    return %c0_i32, %c0_i32_0 : i32, i32
  }
  func.func @transform_9(%arg0: i32) -> (i32, i32) {
    %c0_i32 = arith.constant 0 : i32
    %c0_i32_0 = arith.constant 0 : i32
    %c0_i32_1 = arith.constant 0 : i32
    return %c0_i32, %c0_i32_0 : i32, i32
  }
  func.func @transform_10(%arg0: i32) -> (i32, i32) {
    %c0_i32 = arith.constant 0 : i32
    %c0_i32_0 = arith.constant 0 : i32
    %c0_i32_1 = arith.constant 0 : i32
    return %c0_i32, %c0_i32_0 : i32, i32
  }
  func.func @transform_11(%arg0: i32) -> (i32, i32) {
    %c0_i32 = arith.constant 0 : i32
    %c0_i32_0 = arith.constant 0 : i32
    %c0_i32_1 = arith.constant 0 : i32
    return %c0_i32, %c0_i32_0 : i32, i32
  }
  func.func @transform_12(%arg0: i32) -> (i32, i32) {
    %c0_i32 = arith.constant 0 : i32
    %c0_i32_0 = arith.constant 0 : i32
    %c0_i32_1 = arith.constant 0 : i32
    return %c0_i32, %c0_i32_0 : i32, i32
  }
  func.func @transform_13(%arg0: i32) -> (i32, i32) {
    %c0_i32 = arith.constant 0 : i32
    %c0_i32_0 = arith.constant 0 : i32
    %c0_i32_1 = arith.constant 0 : i32
    return %c0_i32, %c0_i32_0 : i32, i32
  }
  func.func @transform_14(%arg0: i32) -> (i32, i32) {
    %c0_i32 = arith.constant 0 : i32
    %c0_i32_0 = arith.constant 0 : i32
    %c0_i32_1 = arith.constant 0 : i32
    return %c0_i32, %c0_i32_0 : i32, i32
  }
  func.func @transform_15(%arg0: i32) -> (i32, i32) {
    %c0_i32 = arith.constant 0 : i32
    %c0_i32_0 = arith.constant 0 : i32
    return %arg0, %c0_i32 : i32, i32
  }
}

</mosaic_0001>

<bundles_post_ra>
// kernel: tpu_custom_call.1
= control target key start
LH: loop header
LB: loop body
LE: loop exit
PB: predicated region body
PF: predicated region fallthrough
CT: control target
= control target key end

     0   :  { %s1248_s0 = inlined_call_operand.hbm [shape: f32[8,32], index: 0, kind: input, shape index: {}]   ;;  %s1249_s1 = inlined_call_operand.hbm [shape: bf16[32,128], index: 1, kind: input, shape index: {}]   ;;  %s1250_s2 = inlined_call_operand.vmem [shape: f32[1,128], index: 2, kind: input, shape index: {}]   ;;  %s1251_s3 = inlined_call_operand.vmem [shape: f32[1,128], index: 3, kind: input, shape index: {}]   ;;  %s1252_s4 = inlined_call_operand.vmem [shape: f32[1,128], index: 4, kind: input, shape index: {}]   ;;  %s1253_s5 = inlined_call_operand.hbm [shape: bf16[128,128], index: 5, kind: input, shape index: {}]   ;;  %s1254_s6 = inlined_call_operand.vmem [shape: f32[1,128], index: 6, kind: input, shape index: {}]   ;;  %s1255_s7 = inlined_call_operand.vmem [shape: f32[1,128], index: 7, kind: input, shape index: {}]   ;;  %s1256_s8 = inlined_call_operand.vmem [shape: f32[1,128], index: 8, kind: input, shape index: {}]   ;;  %s1257_s9 = inlined_call_operand.hbm [shape: bf16[128,128], index: 9, kind: input, shape index: {}]   ;;  %s1258_s10 = inlined_call_operand.vmem [shape: f32[1,128], index: 10, kind: input, shape index: {}]   ;;  %s1259_s11 = inlined_call_operand.vmem [shape: f32[1,128], index: 11, kind: input, shape index: {}]   ;;  %s1260_s12 = inlined_call_operand.vmem [shape: f32[1,128], index: 12, kind: input, shape index: {}]   ;;  %s1261_s13 = inlined_call_operand.hbm [shape: bf16[128,256], index: 13, kind: input, shape index: {}]   ;;  %s1262_s14 = inlined_call_operand.vmem [shape: f32[1,256], index: 14, kind: input, shape index: {}]   ;;  %s1263_s15 = inlined_call_operand.hbm [shape: f32[8,256], index: 15, kind: output, shape index: {}]  }
   0x1   :  { %1265 = sst [smem:[#allocation16_spill]] %s1263_s15 }
   0x2   :  { %20 = vsyncpa [#allocation3], 0 }
   0x3   :  { %21 = vsyncpa [#allocation6], 0 }
   0x4   :  { %22 = vsyncpa [#allocation9], 0 }
   0x5   :  { %23 = vsyncpa [#allocation4], 0  ;;  %s1023_s18 = smov [#allocation5]   ;;  %s883_s22 = scalar_lea.hbm %s1249_s1, 256 }
   0x6   :  { %s39_s19 = sshll.u32 %s1023_s18, 4  ;;  %p884_p0 = scmp.ne.s32.totalorder %s1249_s1, %s883_s22  ;;  %s40_s19 = int_to_ptr.vmem [resolvable:$true] %s39_s19 }
   0x7   :  { %p887_p1 = scmp.lt.u32.totalorder %s883_s22, %s1249_s1 }
   0x9   :  { %p889_p2 = pnand %p887_p1, %p884_p0 }
   0xb   :  { %892 = shalt.err (!%p889_p2)
}
   0xc   :  { %s893_s27 = scalar_lea.vmem %s40_s19, 256  ;;  %p898_p4 = scmp.lt.s32.totalorder %s40_s19, %s40_s19 }
   0xd   :  { %p894_p3 = scmp.ne.s32.totalorder %s40_s19, %s893_s27  ;;  %p899_p5 = scmp.lt.s32.totalorder %s893_s27, %s893_s27 }
   0xf   :  { %p900_p6 = por %p899_p5, %p898_p4 }
  0x11   :  { %p901_p7 = pnand %p900_p6, %p894_p3 }
  0x13   :  { %904 = shalt.err (!%p901_p7)
}
  0x14   :  { %s1024_s28 = smov 64   ;;  %s1025_s29 = smov 4  }
  0x15   :  { %45 = dma.hbm_to_vmem [thread:$0]  %s1249_s1, 256, %s40_s19, [#allocation6], %s1024_s28, %s1024_s28, %s1025_s29  }
  0x16   :  { %s1026_s17 = smov [#allocation8]   ;;  %s1027_s20 = smov [#allocation2]  }
  0x17   :  { %s75_s18 = sshll.u32 %s1026_s17, 4  ;;  %s30_s21 = sshll.u32 %s1027_s20, 4  ;;  %s76_s18 = int_to_ptr.vmem [resolvable:$true] %s75_s18  ;;  %s31_s21 = int_to_ptr.vmem [resolvable:$true] %s30_s21 }
  0x18   :  { %s905_s24 = scalar_lea.hbm %s1257_s9, 1024 }
  0x19   :  { %p906_p8 = scmp.ne.s32.totalorder %s1257_s9, %s905_s24  ;;  %p909_p9 = scmp.lt.u32.totalorder %s905_s24, %s1257_s9 }
  0x1b   :  { %p911_p10 = pnand %p909_p9, %p906_p8 }
  0x1d   :  { %914 = shalt.err (!%p911_p10)
}
  0x1e   :  { %s915_s1 = scalar_lea.vmem %s76_s18, 1024  ;;  %p920_p12 = scmp.lt.s32.totalorder %s76_s18, %s76_s18 }
  0x1f   :  { %p916_p11 = scmp.ne.s32.totalorder %s76_s18, %s915_s1  ;;  %p921_p13 = scmp.lt.s32.totalorder %s915_s1, %s915_s1 }
  0x21   :  { %p922_p0 = por %p921_p13, %p920_p12 }
  0x23   :  { %p923_p1 = pnand %p922_p0, %p916_p11 }
  0x25   :  { %926 = shalt.err (!%p923_p1)
}
  0x26   :  { %81 = dma.hbm_to_vmem [thread:$0]  %s1257_s9, 1024, %s76_s18, [#allocation9], %s1024_s28, %s1024_s28, %s1025_s29  }
  0x27   :  { %s927_s17 = scalar_lea.hbm %s1248_s0, 128 }
  0x28   :  { %p928_p2 = scmp.ne.s32.totalorder %s1248_s0, %s927_s17  ;;  %p931_p3 = scmp.lt.u32.totalorder %s927_s17, %s1248_s0 }
  0x2a   :  { %p933_p4 = pnand %p931_p3, %p928_p2 }
  0x2c   :  { %936 = shalt.err (!%p933_p4)
}
  0x2d   :  { %s937_s25 = scalar_lea.vmem %s31_s21, 128  ;;  %p942_p6 = scmp.lt.s32.totalorder %s31_s21, %s31_s21 }
  0x2e   :  { %p938_p5 = scmp.ne.s32.totalorder %s31_s21, %s937_s25  ;;  %p943_p7 = scmp.lt.s32.totalorder %s937_s25, %s937_s25 }
  0x30   :  { %p944_p8 = por %p943_p7, %p942_p6 }
  0x32   :  { %p945_p9 = pnand %p944_p8, %p938_p5 }
  0x34   :  { %948 = shalt.err (!%p945_p9)
}
  0x35   :  { %33 = dma.hbm_to_vmem [thread:$0]  %s1248_s0, 128, %s31_s21, [#allocation3]  }
  0x36   :  { %s1028_s26 = smov [#allocation7]   ;;  %s1029_s1 = smov [#allocation10]  }
  0x37   :  { %s57_s27 = sshll.u32 %s1028_s26, 4  ;;  %s93_s19 = sshll.u32 %s1029_s1, 4  ;;  %s58_s27 = int_to_ptr.vmem [resolvable:$true] %s57_s27  ;;  %s94_s19 = int_to_ptr.vmem [resolvable:$true] %s93_s19 }
  0x38   :  { %s949_s15 = scalar_lea.hbm %s1253_s5, 1024 }
  0x39   :  { %p950_p10 = scmp.ne.s32.totalorder %s1253_s5, %s949_s15  ;;  %p953_p11 = scmp.lt.u32.totalorder %s949_s15, %s1253_s5 }
  0x3b   :  { %p955_p12 = pnand %p953_p11, %p950_p10 }
  0x3d   :  { %958 = shalt.err (!%p955_p12)
}
  0x3e   :  { %s959_s0 = scalar_lea.vmem %s58_s27, 1024  ;;  %p964_p0 = scmp.lt.s32.totalorder %s58_s27, %s58_s27 }
  0x3f   :  { %p960_p13 = scmp.ne.s32.totalorder %s58_s27, %s959_s0  ;;  %p965_p1 = scmp.lt.s32.totalorder %s959_s0, %s959_s0 }
  0x41   :  { %p966_p2 = por %p965_p1, %p964_p0 }
  0x43   :  { %p967_p3 = pnand %p966_p2, %p960_p13 }
  0x45   :  { %970 = shalt.err (!%p967_p3)
}
  0x46   :  { %63 = dma.hbm_to_vmem [thread:$0]  %s1253_s5, 1024, %s58_s27, [#allocation6], %s1024_s28, %s1024_s28, %s1025_s29  }
  0x47   :  { %s971_s18 = scalar_lea.hbm %s1261_s13, 2048 }
  0x48   :  { %p972_p4 = scmp.ne.s32.totalorder %s1261_s13, %s971_s18  ;;  %p975_p5 = scmp.lt.u32.totalorder %s971_s18, %s1261_s13 }
  0x4a   :  { %p977_p6 = pnand %p975_p5, %p972_p4 }
  0x4c   :  { %980 = shalt.err (!%p977_p6)
}
  0x4d   :  { %s981_s15 = scalar_lea.vmem %s94_s19, 2048  ;;  %p986_p8 = scmp.lt.s32.totalorder %s94_s19, %s94_s19 }
  0x4e   :  { %p982_p7 = scmp.ne.s32.totalorder %s94_s19, %s981_s15  ;;  %p987_p9 = scmp.lt.s32.totalorder %s981_s15, %s981_s15 }
  0x50   :  { %p988_p10 = por %p987_p9, %p986_p8 }
  0x52   :  { %p989_p11 = pnand %p988_p10, %p982_p7 }
  0x54   :  { %992 = shalt.err (!%p989_p11)
}
  0x55   :  { %s1030_s5 = smov 128   ;;  %s1031_s28 = smov 8  }
  0x56   :  { %99 = dma.hbm_to_vmem [thread:$0]  %s1261_s13, 2048, %s94_s19, [#allocation9], %s1030_s5, %s1030_s5, %s1031_s28  }
  0x57   :  { %1015 = dma.done.wait [#allocation3], 128  }
  0x58   :  { %1016 = vsyncadd [#allocation3], 4294967168 }
  0x59   :  { %1017 = dma.done.wait [#allocation6], 1280  }
  0x5a   :  { %1018 = vsyncadd [#allocation6], 4294966016 }
  0x5b   :  { %1019 = dma.done.wait [#allocation9], 3072  }
  0x5c   :  { %1020 = vsyncadd [#allocation9], 4294964224  ;;  %v1032_v0 = vmov 0.0   ;;  %vm1033_vm0 = vmmov 0   ;;  %v819_v1 = vld [vmem:[#allocation5] sm:$0xff]   ;;  %v820_v2 = vld [vmem:[#allocation5 + $0x8] sm:$0xff]  }
  0x5d   :  { %758 = vmatprep.subr.bf16.mxu0 %v1032_v0  ;;  %762 = vmatprep.mubr.msk.bf16.mxu0 %vm1033_vm0, %v1032_v0  ;;  %v118_v3 = vld [vmem:[#allocation2] sm:$0xff]  ;;  %vm143_vm1 = vcmask 261120   ;;  %v821_v12 = vld [vmem:[#allocation7] sm:$0xff]   ;;  %v823_v14 = vld [vmem:[#allocation7 + $0x10] sm:$0xff]  }
  0x5e   :  { %766 = vmatprep.subr.bf16.mxu1 %v1032_v0  ;;  %782 = vmatprep.mubr.msk.bf16.mxu1 %vm1033_vm0, %v1032_v0  ;;  %v119_v4 = vpack.c.bf16 %v118_v3, %v118_v3  ;;  %v690_v5 = vld [vmem:[%s1250_s2] ss:$0 sm:$0xff]  ;;  %v824_v15 = vld [vmem:[#allocation7 + $0x18] sm:$0xff]   ;;  %v825_v16 = vld [vmem:[#allocation7 + $0x20] sm:$0xff]  }
  0x5f   :  { %759 = vmatpush3.bf16.msra.mxu0 %v819_v1  ;;  %767 = vmatpush3.bf16.msra.mxu1 %v821_v12  ;;  %v822_v13 = vld [vmem:[#allocation7 + $0x8] sm:$0xff]   ;;  %v827_v18 = vld [vmem:[#allocation7 + $0x30] sm:$0xff]   ;;  %v828_v19 = vld [vmem:[#allocation7 + $0x38] sm:$0xff]  }
  0x60   :  { %760 = vmatprep.subr.bf16.mxu0 %v1032_v0  ;;  %768 = vmatprep.subr.bf16.mxu1 %v1032_v0  ;;  %v826_v17 = vld [vmem:[#allocation7 + $0x28] sm:$0xff]   ;;  %v829_v47 = vld [vmem:[#allocation8] sm:$0xff]   ;;  %v831_v49 = vld [vmem:[#allocation8 + $0x10] sm:$0xff]  }
  0x61   :  { %v694_v29 = vld [vmem:[%s1251_s3] ss:$0 sm:$0xff]  ;;  %v832_v50 = vld [vmem:[#allocation8 + $0x18] sm:$0xff]   ;;  %v833_v51 = vld [vmem:[#allocation8 + $0x20] sm:$0xff]  }
  0x62   :  { %v695_v31 = vld [vmem:[%s1252_s4] ss:$0 sm:$0xff]  ;;  %v835_v53 = vld [vmem:[#allocation8 + $0x30] sm:$0xff]   ;;  %v836_v54 = vld [vmem:[#allocation8 + $0x38] sm:$0xff]  }
  0x63   :  { %761 = vmatpush3.bf16.msra.mxu0 %v820_v2  ;;  %769 = vmatpush3.bf16.msra.mxu1 %v822_v13  ;;  %v697_v40 = vld [vmem:[%s1254_s6] ss:$0 sm:$0xff] }
  0x64   :  { %786 = vmatprep.subr.bf16.mxu0 %v1032_v0  ;;  %770 = vmatprep.subr.bf16.mxu1 %v1032_v0  ;;  %v830_v48 = vld [vmem:[#allocation8 + $0x8] sm:$0xff]  }
  0x65   :  { %v834_v52 = vld [vmem:[#allocation8 + $0x28] sm:$0xff]  }
  0x66   :  { %763 = vmatmul.mubr.msk.bf16.vlgmr.msra.gmra.mrb[0].mxu0 %vm143_vm1, %v119_v4  ;;  %v706_v1 = vld [vmem:[%s1255_s7] ss:$0 sm:$0xff] }
  0x67   :  { %802 = vmatprep.mubr.msk.bf16.mxu0 %vm1033_vm0, %v1032_v0  ;;  %771 = vmatpush3.bf16.msra.mxu1 %v823_v14 }
  0x68   :  { %772 = vmatprep.subr.bf16.mxu1 %v1032_v0  ;;  %787 = vmatpush3.bf16.msra.mxu0 %v829_v47 }
  0x69   :  { %788 = vmatprep.subr.bf16.mxu0 %v1032_v0 }
  0x6b   :  { %773 = vmatpush3.bf16.msra.mxu1 %v824_v15 }
  0x6c   :  { %774 = vmatprep.subr.bf16.mxu1 %v1032_v0  ;;  %789 = vmatpush3.bf16.msra.mxu0 %v830_v48 }
  0x6d   :  { %790 = vmatprep.subr.bf16.mxu0 %v1032_v0 }
  0x6f   :  { %775 = vmatpush3.bf16.msra.mxu1 %v825_v16 }
  0x70   :  { %776 = vmatprep.subr.bf16.mxu1 %v1032_v0  ;;  %791 = vmatpush3.bf16.msra.mxu0 %v831_v49 }
  0x71   :  { %792 = vmatprep.subr.bf16.mxu0 %v1032_v0 }
  0x73   :  { %777 = vmatpush3.bf16.msra.mxu1 %v826_v17 }
  0x74   :  { %778 = vmatprep.subr.bf16.mxu1 %v1032_v0  ;;  %793 = vmatpush3.bf16.msra.mxu0 %v832_v50 }
  0x75   :  { %794 = vmatprep.subr.bf16.mxu0 %v1032_v0 }
  0x77   :  { %779 = vmatpush3.bf16.msra.mxu1 %v827_v18  ;;  %v837_v18 = vld [vmem:[#allocation10] ss:$8 sps:$4 sm:$0xff]  }
  0x78   :  { %780 = vmatprep.subr.bf16.mxu1 %v1032_v0  ;;  %795 = vmatpush3.bf16.msra.mxu0 %v833_v51 }
  0x79   :  { %796 = vmatprep.subr.bf16.mxu0 %v1032_v0 }
  0x7b   :  { %781 = vmatpush3.bf16.msra.mxu1 %v828_v19  ;;  %v839_v19 = vld [vmem:[#allocation10 + $0x4] ss:$8 sps:$4 sm:$0xff]  }
  0x7c   :  { %797 = vmatpush3.bf16.msra.mxu0 %v834_v52  ;;  %628 = vmatprep.subr.bf16.mxu1 %v839_v19 }
  0x7d   :  { %798 = vmatprep.subr.bf16.mxu0 %v1032_v0 }
  0x80   :  { %799 = vmatpush3.bf16.msra.mxu0 %v835_v53 }
  0x81   :  { %800 = vmatprep.subr.bf16.mxu0 %v1032_v0  ;;  %v707_v0 = vld [vmem:[%s1256_s8] ss:$0 sm:$0xff] }
  0x84   :  { %801 = vmatpush3.bf16.msra.mxu0 %v836_v54 }
 0x139   :  { %v181_v6 = vpop.f32.mrb[0].mxu0 }
 0x13a   :  { %v182_v7 = vadd.f32 %v690_v5, %v181_v6  ;;  %v764_v8 = vpop.f32.mrb[1].mxu0 }
 0x13b   :  { %v184_v9 = vpop.f32.mrb[2].mxu0 }
 0x13c   :  { %189 = vadd.xlane.f32.xlu0 %v182_v7  ;;  %v765_v10 = vpop.f32.mrb[3].mxu0  ;;  %v191_v11 = vmul.f32 %v182_v7, %v182_v7 }
 0x140   :  { %192 = vadd.xlane.f32.xlu0 %v191_v11  ;;  %v709_v11 = vld [vmem:[%s1258_s10] ss:$0 sm:$0xff] }
 0x1c9   :  { %v190_v20 = vpop.xlane.xlu0 %189 }
 0x1ca   :  { %v194_v21 = vmul.f32 0.020833334, %v190_v20  ;;  %v842_v20 = vld [vmem:[#allocation10 + $0x14] ss:$8 sps:$4 sm:$0xff]  }
 0x1cc   :  { %v196_v23 = vmul.f32 %v194_v21, %v194_v21  ;;  %v198_v27 = vsub.f32 %v182_v7, %v194_v21  ;;  %v840_v21 = vld [vmem:[#allocation10 + $0x10] ss:$8 sps:$4 sm:$0xff]  }
 0x1cd   :  { %v193_v22 = vpop.xlane.xlu0 %192 }
 0x1ce   :  { %v195_v24 = vmul.f32 0.020833334, %v193_v22  ;;  %v845_v22 = vld [vmem:[#allocation10 + $0x24] ss:$8 sps:$4 sm:$0xff]  }
 0x1d0   :  { %v197_v25 = vsub.f32 %v195_v24, %v196_v23  ;;  %v1034_v23 = vmov 0   ;;  %v843_v24 = vld [vmem:[#allocation10 + $0x20] ss:$8 sps:$4 sm:$0xff]  }
 0x1d2   :  { %v199_v26 = vadd.f32 1e-05, %v197_v25  ;;  %v848_v25 = vld [vmem:[#allocation10 + $0x34] ss:$8 sps:$4 sm:$0xff]  }
 0x1d4   :  { %861 = vrsqrt.f32 %v199_v26  ;;  %v846_v26 = vld [vmem:[#allocation10 + $0x30] ss:$8 sps:$4 sm:$0xff]  }
 0x1de   :  { %v862_v28 = vpop.eup %861 }
 0x1df   :  { %v201_v30 = vmul.f32 %v862_v28, %v198_v27  ;;  %v851_v27 = vld [vmem:[#allocation10 + $0x44] ss:$8 sps:$4 sm:$0xff]   ;;  %v849_v28 = vld [vmem:[#allocation10 + $0x40] ss:$8 sps:$4 sm:$0xff]  }
 0x1e1   :  { %v208_v32 = vmul.f32 %v694_v29, %v201_v30  ;;  %v854_v29 = vld [vmem:[#allocation10 + $0x54] ss:$8 sps:$4 sm:$0xff]   ;;  %v852_v30 = vld [vmem:[#allocation10 + $0x50] ss:$8 sps:$4 sm:$0xff]  }
 0x1e3   :  { %v215_v33 = vadd.f32 %v695_v31, %v208_v32  ;;  %v857_v31 = vld [vmem:[#allocation10 + $0x64] ss:$8 sps:$4 sm:$0xff]   ;;  %v855_v32 = vld [vmem:[#allocation10 + $0x60] ss:$8 sps:$4 sm:$0xff]  }
 0x1e5   :  { %v696_v34 = vmul.f32 -1.442695, %v215_v33 }
 0x1e7   :  { %863 = vpow2.f32 %v696_v34  ;;  %v858_v34 = vld [vmem:[#allocation10 + $0x70] ss:$8 sps:$4 sm:$0xff]  }
 0x1f1   :  { %v864_v35 = vpop.eup %863 }
 0x1f2   :  { %v219_v36 = vadd.f32 1.0, %v864_v35 }
 0x1f4   :  { %865 = vrcp.f32 %v219_v36 }
 0x1fe   :  { %v866_v37 = vpop.eup %865 }
 0x1ff   :  { %v222_v38 = vmul.f32 %v866_v37, %v215_v33  ;;  %v860_v33 = vld [vmem:[#allocation10 + $0x74] ss:$8 sps:$4 sm:$0xff]  }
 0x201   :  { %v223_v39 = vpack.c.bf16 %v222_v38, %v222_v38 }
 0x203   :  { %783 = vmatmul.mubr.bf16.vlgmr.msra.gmra.mrb[0].mxu1 %v223_v39 }
 0x204   :  { %629 = vmatpush1.bf16.msra.mxu1 %v837_v18  ;;  %660 = vmatprep.mubr.bf16.mxu1 %v1034_v23 }
 0x205   :  { %630 = vmatprep.subr.bf16.mxu1 %v842_v20 }
 0x208   :  { %631 = vmatpush1.bf16.msra.mxu1 %v840_v21 }
 0x209   :  { %632 = vmatprep.subr.bf16.mxu1 %v845_v22 }
 0x20c   :  { %633 = vmatpush1.bf16.msra.mxu1 %v843_v24 }
 0x20d   :  { %634 = vmatprep.subr.bf16.mxu1 %v848_v25 }
 0x210   :  { %635 = vmatpush1.bf16.msra.mxu1 %v846_v26 }
 0x211   :  { %636 = vmatprep.subr.bf16.mxu1 %v851_v27 }
 0x214   :  { %637 = vmatpush1.bf16.msra.mxu1 %v849_v28 }
 0x215   :  { %638 = vmatprep.subr.bf16.mxu1 %v854_v29 }
 0x218   :  { %639 = vmatpush1.bf16.msra.mxu1 %v852_v30 }
 0x219   :  { %640 = vmatprep.subr.bf16.mxu1 %v857_v31 }
 0x21c   :  { %641 = vmatpush1.bf16.msra.mxu1 %v855_v32 }
 0x21d   :  { %642 = vmatprep.subr.bf16.mxu1 %v860_v33 }
 0x220   :  { %643 = vmatpush1.bf16.msra.mxu1 %v858_v34 }
 0x2d6   :  { %v329_v41 = vpop.f32.mrb[0].mxu1 }
 0x2d7   :  { %v330_v42 = vadd.f32 %v697_v40, %v329_v41  ;;  %v784_v43 = vpop.f32.mrb[1].mxu1 }
 0x2d8   :  { %v332_v44 = vpop.f32.mrb[2].mxu1 }
 0x2d9   :  { %337 = vadd.xlane.f32.xlu1 %v330_v42  ;;  %v785_v45 = vpop.f32.mrb[3].mxu1  ;;  %v339_v46 = vmul.f32 %v330_v42, %v330_v42  ;;  %v718_v44 = vld [vmem:[%s1259_s11] ss:$0 sm:$0xff] }
 0x2dd   :  { %340 = vadd.xlane.f32.xlu1 %v339_v46  ;;  %v719_v46 = vld [vmem:[%s1260_s12] ss:$0 sm:$0xff]  ;;  %s1035_s12 = smov [#allocation11]  }
 0x2de   :  { %s679_s26 = sshll.u32 %s1035_s12, 4  ;;  %s680_s26 = int_to_ptr.vmem [resolvable:$true] %s679_s26 }
 0x2df   :  { %s993_s1 = scalar_lea.vmem %s680_s26, 256  ;;  %p998_p13 = scmp.lt.s32.totalorder %s680_s26, %s680_s26 }
 0x2e0   :  { %p994_p12 = scmp.ne.s32.totalorder %s680_s26, %s993_s1  ;;  %p999_p0 = scmp.lt.s32.totalorder %s993_s1, %s993_s1 }
 0x2e2   :  { %p1000_p1 = por %p999_p0, %p998_p13 }
 0x2e4   :  { %p1001_p2 = pnand %p1000_p1, %p994_p12 }
 0x366   :  { %v338_v55 = vpop.xlane.xlu1 %337 }
 0x367   :  { %v342_v56 = vmul.f32 0.013888889, %v338_v55  ;;  %v538_v55 = vlaneseq }
 0x369   :  { %v344_v58 = vmul.f32 %v342_v56, %v342_v56  ;;  %v346_v62 = vsub.f32 %v330_v42, %v342_v56  ;;  %v539_v56 = vshrl.u32 %v538_v55, 7 }
 0x36a   :  { %v341_v57 = vpop.xlane.xlu1 %340 }
 0x36b   :  { %v343_v59 = vmul.f32 0.013888889, %v341_v57  ;;  %v540_v57 = vsub.s32 0, %v539_v56 }
 0x36d   :  { %v345_v60 = vsub.f32 %v343_v59, %v344_v58  ;;  %v536_v58 = vld [vmem:[%s1262_s14] sm:$0x3]  ;;  %v544_v59 = vsub.s32 1, %v539_v56 }
 0x36f   :  { %v347_v61 = vadd.f32 1e-05, %v345_v60  ;;  %v541_v60 = vrot.slane %v536_v58, %v540_v57 }
 0x371   :  { %867 = vrsqrt.f32 %v347_v61  ;;  %v545_v61 = vrot.slane %v536_v58, %v544_v59 }
 0x37b   :  { %v868_v63 = vpop.eup %867 }
 0x37c   :  { %v349_v2 = vmul.f32 %v868_v63, %v346_v62 }
 0x37e   :  { %v356_v3 = vmul.f32 %v706_v1, %v349_v2 }
 0x380   :  { %v363_v4 = vadd.f32 %v707_v0, %v356_v3 }
 0x382   :  { %v708_v5 = vmul.f32 -1.442695, %v363_v4 }
 0x384   :  { %869 = vpow2.f32 %v708_v5 }
 0x38e   :  { %v870_v6 = vpop.eup %869 }
 0x38f   :  { %v367_v7 = vadd.f32 1.0, %v870_v6 }
 0x391   :  { %871 = vrcp.f32 %v367_v7 }
 0x39b   :  { %v872_v8 = vpop.eup %871 }
 0x39c   :  { %v370_v9 = vmul.f32 %v872_v8, %v363_v4 }
 0x39e   :  { %v371_v10 = vpack.c.bf16 %v370_v9, %v370_v9 }
 0x3a0   :  { %803 = vmatmul.mubr.bf16.vlgmr.msra.gmra.mrb[4].mxu0 %v371_v10 }
 0x473   :  { %v477_v12 = vpop.f32.mrb[4].mxu0 }
 0x474   :  { %v478_v13 = vadd.f32 %v709_v11, %v477_v12  ;;  %v804_v14 = vpop.f32.mrb[5].mxu0 }
 0x475   :  { %v480_v15 = vpop.f32.mrb[6].mxu0 }
 0x476   :  { %485 = vadd.xlane.f32.xlu0 %v478_v13  ;;  %v805_v16 = vpop.f32.mrb[7].mxu0  ;;  %v487_v17 = vmul.f32 %v478_v13, %v478_v13 }
 0x478   :  { %488 = vadd.xlane.f32.xlu1 %v487_v17 }
 0x503   :  { %v486_v35 = vpop.xlane.xlu0 %485 }
 0x504   :  { %v490_v36 = vmul.f32 0.00862069, %v486_v35 }
 0x505   :  { %v489_v37 = vpop.xlane.xlu1 %488 }
 0x506   :  { %v492_v38 = vmul.f32 %v490_v36, %v490_v36  ;;  %v491_v39 = vmul.f32 0.00862069, %v489_v37  ;;  %v494_v42 = vsub.f32 %v478_v13, %v490_v36 }
 0x508   :  { %v493_v40 = vsub.f32 %v491_v39, %v492_v38 }
 0x50a   :  { %v495_v41 = vadd.f32 1e-05, %v493_v40 }
 0x50c   :  { %873 = vrsqrt.f32 %v495_v41 }
 0x516   :  { %v874_v43 = vpop.eup %873 }
 0x517   :  { %v497_v45 = vmul.f32 %v874_v43, %v494_v42 }
 0x519   :  { %v504_v47 = vmul.f32 %v718_v44, %v497_v45 }
 0x51b   :  { %v511_v48 = vadd.f32 %v719_v46, %v504_v47 }
 0x51d   :  { %v720_v49 = vmul.f32 -1.442695, %v511_v48 }
 0x51f   :  { %875 = vpow2.f32 %v720_v49 }
 0x529   :  { %v876_v50 = vpop.eup %875 }
 0x52a   :  { %v515_v51 = vadd.f32 1.0, %v876_v50 }
 0x52c   :  { %877 = vrcp.f32 %v515_v51 }
 0x536   :  { %v878_v52 = vpop.eup %877 }
 0x537   :  { %v518_v53 = vmul.f32 %v878_v52, %v511_v48 }
 0x539   :  { %v519_v54 = vpack.c.bf16 %v518_v53, %v518_v53 }
 0x53b   :  { %661 = vmatmul.mubr.bf16.vlgmr.msra.gmra.mrb[4].mxu1 %v519_v54 }
 0x60e   :  { %v662_v62 = vpop.f32.mrb[4].mxu1 }
 0x60f   :  { %v663_v63 = vadd.f32 %v662_v62, %v541_v60  ;;  %v664_v1 = vpop.f32.mrb[5].mxu1 }
 0x610   :  { %v665_v2 = vadd.f32 %v664_v1, %v545_v61  ;;  %v666_v0 = vpop.f32.mrb[6].mxu1 }
 0x611   :  { %879 = vtanh.f32 %v663_v63  ;;  %v667_v3 = vpop.f32.mrb[7].mxu1 }
 0x612   :  { %881 = vtanh.f32 %v665_v2 }
 0x61b   :  { %v880_v4 = vpop.eup %879 }
 0x61c   :  { %v882_v5 = vpop.eup %881  ;;  %671 = vst [vmem:[#allocation11] sm:$0xff] %v880_v4 }
 0x61d   :  { %672 = vst [vmem:[#allocation11 + $0x8] sm:$0xff] %v882_v5 }
 0x61e   :  { %1004 = shalt.err (!%p1001_p2)
}
 0x61f   :  { %s1266_s16 = sld [smem:[#allocation16_spill]] }
 0x625   :  { %s1005_s15 = scalar_lea.hbm %s1266_s16, 256 }
 0x626   :  { %p1006_p3 = scmp.ne.s32.totalorder %s1266_s16, %s1005_s15  ;;  %p1009_p4 = scmp.lt.u32.totalorder %s1005_s15, %s1266_s16 }
 0x628   :  { %p1011_p5 = pnand %p1009_p4, %p1006_p3 }
 0x62a   :  { %1014 = shalt.err (!%p1011_p5)
}
 0x62b   :  { %682 = dma.vmem_to_hbm [thread:$0]  %s680_s26, 256, %s1266_s16, [#allocation4]  }
 0x62c   :  { %1021 = dma.done.wait [#allocation4], 256  }
 0x62d   :  { %1022 = vsyncadd [#allocation4], 4294967040 }
 0x62e   :  { %686 = vsyncpa [#allocation3], 1 }
 0x62f   :  { %687 = vsyncpa [#allocation6], 1 }
 0x630   :  { %688 = vsyncpa [#allocation9], 1 }
 0x631   :  { %689 = vsyncpa [#allocation4], 1 }

</bundles_post_ra>
